<compile_context>
chip_gen: v7x
topology: tpu7x:2x2x1
jax: 0.10.0
libtpu: 0.0.40
codegen_flags: <defaults>
</compile_context>

<pallas_src>
import jax
import jax.numpy as jnp
from jax.experimental import pallas as pl
from jax.experimental.pallas import tpu as pltpu


# --------------------------------------------------------------------------------------
# Single-step kernel (matches the PyTorch module's forward exactly).
# --------------------------------------------------------------------------------------
def rnnstep_kernel(x_ref, h_ref, rowp_ref, w2_ref, out_ref, h_new_ref):
    # x:    [B, 1]          h:  [B, H]
    # rowp: [4, H]  rows = (w1, b1+b2, wo, [bo, 0, ...])
    # w2:   [H, H]  (pre-transposed to [in, out])
    w1 = rowp_ref[0:1, :]
    b12 = rowp_ref[1:2, :]
    wo = rowp_ref[2:3, :]
    bo = rowp_ref[3:4, 0:1]

    # Rank-1 input projection on the VPU (broadcast multiply), not the MXU.
    x1 = x_ref[...] * w1                                            # [B,1]*[1,H] -> [B,H]

    # The only real GEMM (60x60) on the MXU with explicit f32 accumulation.
    h2 = jnp.dot(h_ref[...], w2_ref[...], preferred_element_type=jnp.float32)

    h_new = jnp.tanh(x1 + h2 + b12)                                 # EUP tanh, f32

    # N=1 output projection: VPU multiply + XLU lane reduce instead of a 1-column matmul.
    out = jnp.sum(h_new * wo, axis=-1, keepdims=True) + bo

    out_ref[...] = out.astype(out_ref.dtype)
    h_new_ref[...] = h_new.astype(h_new_ref.dtype)


def _pack_row_params(params, H):
    w1, b1, w2, b2, wo, bo = params
    b12 = b1 + b2                                   # fold the two [1,H] biases
    bo_row = jnp.pad(bo, ((0, 0), (0, H - 1)))      # bo in lane 0 of row 3
    rowp = jnp.concatenate([w1, b12, wo, bo_row], axis=0)           # [4, H]
    return rowp, w2


def rnnstep(x, hidden, params):
    """One RNN step.  x: [B,1] f32, hidden: [B,H] f32 -> (out [B,1], new_hidden [B,H])."""
    B = x.shape[0]
    H = hidden.shape[1]
    rowp, w2 = _pack_row_params(params, H)

    full = lambda shp: pl.BlockSpec(shp, lambda: (0,) * len(shp))

    cost = pl.CostEstimate(
        flops=2 * B * H * H + 5 * B * H,
        transcendentals=B * H,
        bytes_accessed=4 * (B * 1 + B * H + 4 * H + H * H + B * 1 + B * H),
    )

    out, h_new = pl.pallas_call(
        rnnstep_kernel,
        out_shape=(
            jax.ShapeDtypeStruct((B, 1), jnp.float32),
            jax.ShapeDtypeStruct((B, H), jnp.float32),
        ),
        grid=(),
        in_specs=[
            full((B, 1)),      # x
            full((B, H)),      # hidden
            full((4, H)),      # packed rows: w1, b1+b2, wo, bo
            full((H, H)),      # W2^T
        ],
        out_specs=(
            full((B, 1)),
            full((B, H)),
        ),
        cost_estimate=cost,
    )(x, hidden, rowp, w2)
    return out, h_new


# --------------------------------------------------------------------------------------
# Fused sequence kernel: one pallas_call over T steps, h resident in VMEM scratch.
# --------------------------------------------------------------------------------------
def rnn_seq_kernel(x1_ref, h0_ref, w2_ref, hall_ref, h_scratch):
    # x1:  [1, B, H] block (precomputed x*w1 + b12 for this step)
    # h0:  [B, H]    (constant index_map -> fetched once)
    # w2:  [H, H]    (constant index_map -> fetched once)
    # hall: [1, B, H] output block for this step
    # h_scratch: [B, H] f32 VMEM, persists across grid steps
    t = pl.program_id(0)

    @pl.when(t == 0)
    def _():
        h_scratch[...] = h0_ref[...]

    h_new = jnp.tanh(
        x1_ref[0]
        + jnp.dot(h_scratch[...], w2_ref[...], preferred_element_type=jnp.float32)
    )
    h_scratch[...] = h_new
    hall_ref[...] = h_new[None].astype(hall_ref.dtype)


def rnn_sequence(x_seq, h0, params):
    """Run the RNN over a whole sequence in one pallas_call.

    x_seq: [T, B, 1] f32, h0: [B, H] f32
    returns (out_seq [T, B, 1], final_hidden [B, H])
    """
    w1, b1, w2, b2, wo, bo = params
    T, B, _ = x_seq.shape
    H = h0.shape[1]

    # Hoisted input projection (non-recurrent): one lane-dense batched op.
    b12 = b1 + b2
    x1_all = x_seq * w1 + b12                                        # [T, B, H]

    cost = pl.CostEstimate(
        flops=T * (2 * B * H * H + B * H),
        transcendentals=T * B * H,
        bytes_accessed=4 * (T * B * H + B * H + H * H + T * B * H),
    )

    h_all = pl.pallas_call(
        rnn_seq_kernel,
        out_shape=jax.ShapeDtypeStruct((T, B, H), jnp.float32),
        grid_spec=pltpu.PrefetchScalarGridSpec(
            num_scalar_prefetch=0,
            grid=(T,),
            in_specs=[
                pl.BlockSpec((1, B, H), lambda t: (t, 0, 0)),   # X1 step t
                pl.BlockSpec((B, H), lambda t: (0, 0)),          # h0 (constant)
                pl.BlockSpec((H, H), lambda t: (0, 0)),          # W2^T (constant)
            ],
            out_specs=pl.BlockSpec((1, B, H), lambda t: (t, 0, 0)),
            scratch_shapes=[pltpu.VMEM((B, H), jnp.float32)],
        ),
        compiler_params=pltpu.CompilerParams(dimension_semantics=("arbitrary",)),
        cost_estimate=cost,
    )(x1_all, h0, w2)

    # Hoisted output projection (non-recurrent), lane-dense batched matmul.
    out_seq = h_all @ wo.T + bo                                      # [T, B, 1]
    return out_seq, h_all[-1]


# --------------------------------------------------------------------------------------
# Params / reference
# --------------------------------------------------------------------------------------
def init_params(key, hidden_dim=60):
    # Deterministic synthetic init (mimics nn.Linear uniform(-1/sqrt(fan_in), +...)).
    k1, k2, k3, k4, k5, k6 = jax.random.split(key, 6)

    def uinit(k, shape, fan_in):
        bound = 1.0 / jnp.sqrt(fan_in)
        return jax.random.uniform(k, shape, jnp.float32, -bound, bound)

    # L1: Linear(1, 60)  -> weight [60,1]; stored as a row [1,60]
    w1 = uinit(k1, (1, hidden_dim), 1.0)
    b1 = uinit(k2, (1, hidden_dim), 1.0)
    # L2: Linear(60, 60) -> weight [60,60]; stored transposed [in,out]
    w2 = uinit(k3, (hidden_dim, hidden_dim), float(hidden_dim))
    b2 = uinit(k4, (1, hidden_dim), float(hidden_dim))
    # Lo: Linear(60, 1)  -> weight [1,60]; stored as a row [1,60]
    wo = uinit(k5, (1, hidden_dim), float(hidden_dim))
    bo = uinit(k6, (1, 1), float(hidden_dim))
    return (w1, b1, w2, b2, wo, bo)


def rnnstep_ref(x, hidden, params):
    w1, b1, w2, b2, wo, bo = params
    x1 = x @ w1 + b1                         # [B,1] @ [1,H]
    h_new = jnp.tanh(x1 + hidden @ w2 + b2)  # [B,H]
    out = h_new @ wo.T + bo                  # [B,H] @ [H,1]
    return out, h_new


if __name__ == "__main__":
    key = jax.random.PRNGKey(0)
    kp, kx, kh, ks = jax.random.split(key, 4)

    B, H, T = 8, 60, 16
    params = init_params(kp, H)
    x = jax.random.normal(kx, (B, 1), jnp.float32)
    hidden = jax.random.normal(kh, (B, H), jnp.float32)

    # --- single step (module forward semantics) ---
    out, h_new = rnnstep(x, hidden, params)
    jax.block_until_ready((out, h_new))
    out_r, h_r = rnnstep_ref(x, hidden, params)
    assert jnp.allclose(out, out_r, atol=1e-5, rtol=1e-5)
    assert jnp.allclose(h_new, h_r, atol=1e-5, rtol=1e-5)

    # --- fused sequence (structural optimization from the perf review) ---
    x_seq = jax.random.normal(ks, (T, B, 1), jnp.float32)
    out_seq, h_last = rnn_sequence(x_seq, hidden, params)
    jax.block_until_ready((out_seq, h_last))

    h = hidden
    outs_ref = []
    for t in range(T):
        o, h = rnnstep_ref(x_seq[t], h, params)
        outs_ref.append(o)
    out_seq_ref = jnp.stack(outs_ref, axis=0)
    assert jnp.allclose(out_seq, out_seq_ref, atol=1e-4, rtol=1e-4)
    assert jnp.allclose(h_last, h, atol=1e-4, rtol=1e-4)

    print("KERNEL_OK")
</pallas_src>

<mosaic_0001>
module attributes {stable_mosaic.version = 11 : i64} {
  func.func @rnnstep_kernel(%arg0: memref<8x1xf32, #tpu.memory_space<vmem>>, %arg1: memref<8x60xf32, #tpu.memory_space<vmem>>, %arg2: memref<4x60xf32, #tpu.memory_space<vmem>>, %arg3: memref<60x60xf32, #tpu.memory_space<vmem>>, %arg4: memref<8x1xf32, #tpu.memory_space<vmem>>, %arg5: memref<8x60xf32, #tpu.memory_space<vmem>>) attributes {dimension_semantics = [], scalar_prefetch = 0 : i64, scratch_operands = 0 : i64, tpu.core_type = #tpu.core_type<tc>} {
    %c0 = arith.constant 0 : index
    %c0_0 = arith.constant 0 : index
    %0 = vector.load %arg2[%c0, %c0_0] : memref<4x60xf32, #tpu.memory_space<vmem>>, vector<1x60xf32>
    %c1 = arith.constant 1 : index
    %c0_1 = arith.constant 0 : index
    %1 = vector.load %arg2[%c1, %c0_1] : memref<4x60xf32, #tpu.memory_space<vmem>>, vector<1x60xf32>
    %c2 = arith.constant 2 : index
    %c0_2 = arith.constant 0 : index
    %2 = vector.load %arg2[%c2, %c0_2] : memref<4x60xf32, #tpu.memory_space<vmem>>, vector<1x60xf32>
    %c3 = arith.constant 3 : index
    %c0_3 = arith.constant 0 : index
    %3 = vector.load %arg2[%c3, %c0_3] : memref<4x60xf32, #tpu.memory_space<vmem>>, vector<1x1xf32>
    %c0_4 = arith.constant 0 : index
    %c0_5 = arith.constant 0 : index
    %4 = vector.load %arg0[%c0_4, %c0_5] : memref<8x1xf32, #tpu.memory_space<vmem>>, vector<8x1xf32>
    %5 = vector.broadcast %4 : vector<8x1xf32> to vector<8x60xf32>
    %6 = vector.broadcast %0 : vector<1x60xf32> to vector<8x60xf32>
    %7 = arith.mulf %5, %6 : vector<8x60xf32>
    %c0_6 = arith.constant 0 : index
    %c0_7 = arith.constant 0 : index
    %8 = vector.load %arg1[%c0_6, %c0_7] : memref<8x60xf32, #tpu.memory_space<vmem>>, vector<8x60xf32>
    %c0_8 = arith.constant 0 : index
    %c0_9 = arith.constant 0 : index
    %9 = vector.load %arg3[%c0_8, %c0_9] : memref<60x60xf32, #tpu.memory_space<vmem>>, vector<60x60xf32>
    %cst = arith.constant dense<0.000000e+00> : vector<8x60xf32>
    %10 = tpu.matmul %8, %9, %cst {dimension_numbers = #tpu.dot_dimension_numbers<[1], [0], [0], [1], [0, 0, 1, 1], [], []>} : vector<8x60xf32>, vector<60x60xf32>, vector<8x60xf32> -> vector<8x60xf32>
    %11 = arith.addf %7, %10 : vector<8x60xf32>
    %12 = vector.broadcast %1 : vector<1x60xf32> to vector<8x60xf32>
    %13 = arith.addf %11, %12 : vector<8x60xf32>
    %14 = math.tanh %13 : vector<8x60xf32>
    %15 = vector.broadcast %2 : vector<1x60xf32> to vector<8x60xf32>
    %16 = arith.mulf %14, %15 : vector<8x60xf32>
    %cst_10 = arith.constant dense<0.000000e+00> : vector<8xf32>
    %17 = vector.multi_reduction <add>, %16, %cst_10 [1] : vector<8x60xf32> to vector<8xf32>
    %18 = vector.shape_cast %17 : vector<8xf32> to vector<8x1xf32>
    %19 = vector.broadcast %3 : vector<1x1xf32> to vector<8x1xf32>
    %20 = arith.addf %18, %19 : vector<8x1xf32>
    %c0_11 = arith.constant 0 : index
    %c0_12 = arith.constant 0 : index
    %21 = vector.load %arg4[%c0_11, %c0_12] : memref<8x1xf32, #tpu.memory_space<vmem>>, vector<8x1xf32>
    tpu.vector_store %arg4[%c0_11, %c0_12], %20 {strides = array<i32>} : memref<8x1xf32, #tpu.memory_space<vmem>>, vector<8x1xf32>,
    %c0_13 = arith.constant 0 : index
    %c0_14 = arith.constant 0 : index
    %22 = vector.load %arg5[%c0_13, %c0_14] : memref<8x60xf32, #tpu.memory_space<vmem>>, vector<8x60xf32>
    tpu.vector_store %arg5[%c0_13, %c0_14], %14 {strides = array<i32>} : memref<8x60xf32, #tpu.memory_space<vmem>>, vector<8x60xf32>,
    return
  }
}

</mosaic_0001>

<bundles_post_ra>
// kernel: tpu_custom_call.1
= control target key start
LH: loop header
LB: loop body
LE: loop exit
PB: predicated region body
PF: predicated region fallthrough
CT: control target
= control target key end

     0   :  { %11 = vsyncpa [#allocation3], 0  ;;  %s369_s0 = inlined_call_operand.vmem [shape: f32[8,1], index: 0, kind: input, shape index: {}]   ;;  %s370_s1 = inlined_call_operand.vmem [shape: f32[8,60], index: 1, kind: input, shape index: {}]   ;;  %s371_s2 = inlined_call_operand.vmem [shape: f32[4,60], index: 2, kind: input, shape index: {}]   ;;  %s372_s3 = inlined_call_operand.hbm [shape: f32[60,60], index: 3, kind: input, shape index: {}]   ;;  %s373_s4 = inlined_call_operand.vmem [shape: f32[8,1], index: 4, kind: output, shape index: {0}]   ;;  %s374_s5 = inlined_call_operand.hbm [shape: f32[8,60], index: 5, kind: output, shape index: {1}]  }
   0x1   :  { %12 = vsyncpa [#allocation4], 0  ;;  %s285_s18 = smov [#allocation2]   ;;  %s237_s22 = scalar_lea.hbm %s372_s3, 1024 }
   0x2   :  { %s24_s19 = sshll.u32 %s285_s18, 4  ;;  %p238_p0 = scmp.ne.s32.totalorder %s372_s3, %s237_s22  ;;  %s25_s19 = int_to_ptr.vmem [resolvable:$true] %s24_s19 }
   0x3   :  { %p241_p1 = scmp.lt.u32.totalorder %s237_s22, %s372_s3 }
   0x5   :  { %p243_p2 = pnand %p241_p1, %p238_p0 }
   0x7   :  { %246 = shalt.err (!%p243_p2)
}
   0x8   :  { %s247_s27 = scalar_lea.vmem %s25_s19, 1024  ;;  %p252_p4 = scmp.lt.s32.totalorder %s25_s19, %s25_s19 }
   0x9   :  { %p248_p3 = scmp.ne.s32.totalorder %s25_s19, %s247_s27  ;;  %p253_p5 = scmp.lt.s32.totalorder %s247_s27, %s247_s27 }
   0xb   :  { %p254_p6 = por %p253_p5, %p252_p4 }
   0xd   :  { %p255_p7 = pnand %p254_p6, %p248_p3 }
   0xf   :  { %258 = shalt.err (!%p255_p7)
}
  0x10   :  { %s286_s28 = smov 128   ;;  %s287_s29 = smov 8  }
  0x11   :  { %30 = dma.hbm_to_vmem [thread:$0]  %s372_s3, 1024, %s25_s19, [#allocation3], %s286_s28, %s286_s28, %s287_s29  }
  0x12   :  { %281 = dma.done.wait [#allocation3], 1024  }
  0x13   :  { %282 = vsyncadd [#allocation3], 4294966272  ;;  %v288_v0 = vmov 0.0|0.0   ;;  %vm289_vm0 = vmmov 0   ;;  %v290_v1 = vmov 0.0   ;;  %v291_v2 = vmov 0  }
  0x14   :  { %212 = vmatprep.subr.bf16.mxu0 %v288_v0  ;;  %209 = vmatprep.mubr.msk.f32.mxu0 %vm289_vm0, %v290_v1  ;;  %v50_v3 = vld [vmem:[#allocation2] sm:$0xff]  ;;  %v51_v4 = vld [vmem:[#allocation2 + $0x8] sm:$0xff]  ;;  %v52_v5 = vld [vmem:[#allocation2 + $0x10] sm:$0xff]  ;;  %vm62_vm1 = vcmask 1043456   ;;  %vm292_vm2 = vmmov 1   ;;  %vm58_vm4 = vcmask 490496  }
  0x15   :  { %234 = vset.pattern.permute.xlu0 %v291_v2  ;;  %v213_v6 = vpack.c.bf16 %v51_v4, %v50_v3  ;;  %v53_v7 = vld [vmem:[#allocation2 + $0x18] sm:$0xff]  ;;  %v38_v9 = vld [vmem:[%s369_s0] sm:$0xff]  ;;  %v55_v11 = vld [vmem:[#allocation2 + $0x28] sm:$0xff] }
  0x16   :  { %v216_v8 = vpack.c.bf16 %v53_v7, %v52_v5  ;;  %v54_v10 = vld [vmem:[#allocation2 + $0x20] sm:$0xff]  ;;  %41 = vperm.xlu0 %234, %v38_v9   ;;  %v56_v13 = vld [vmem:[#allocation2 + $0x30] sm:$0xff]  ;;  %v57_v14 = vld [vmem:[#allocation2 + $0x38] sm:$0xf] }
  0x17   :  { %214 = vmatpush3.bf16.msra.mxu0 %v213_v6  ;;  %v219_v12 = vpack.c.bf16 %v55_v11, %v54_v10  ;;  %v222_v15 = vpack.c.bf16 %v57_v14, %v56_v13  ;;  %vm223_vm3 = vmpackc.low %vm62_vm1, %vm292_vm2  ;;  %v49_v16 = vld [vmem:[%s370_s1] sm:$0xff]  ;;  %s293_s1 = smov [#allocation5]  }
  0x18   :  { %215 = vmatprep.subr.bf16.mxu0 %v288_v0  ;;  %v178_v18 = vld [vmem:[%s371_s2] ss:$0 sm:$0xff]  ;;  %v181_v20 = vld [vmem:[%s371_s2 + $0x1] ss:$0 sm:$0xff]  ;;  %v182_v25 = vld [vmem:[%s371_s2 + $0x2] ss:$0 sm:$0xff] }
  0x19   :  { %s167_s15 = sshll.u32 %s293_s1, 4  ;;  %s168_s15 = int_to_ptr.vmem [resolvable:$true] %s167_s15 }
  0x1a   :  { %s259_s16 = scalar_lea.vmem %s168_s15, 128  ;;  %p264_p9 = scmp.lt.s32.totalorder %s168_s15, %s168_s15 }
  0x1b   :  { %217 = vmatpush3.bf16.msra.mxu0 %v216_v8  ;;  %p260_p8 = scmp.ne.s32.totalorder %s168_s15, %s259_s16  ;;  %p265_p10 = scmp.lt.s32.totalorder %s259_s16, %s259_s16 }
  0x1c   :  { %218 = vmatprep.subr.bf16.mxu0 %v288_v0 }
  0x1d   :  { %p266_p11 = por %p265_p10, %p264_p9 }
  0x1f   :  { %220 = vmatpush3.bf16.msra.mxu0 %v219_v12  ;;  %p267_p12 = pnand %p266_p11, %p260_p8 }
  0x20   :  { %221 = vmatprep.subr.bf16.mxu0 %v288_v0 }
  0x23   :  { %224 = vmatpush3.bf16.msk.msra.mxu0 %vm223_vm3, %v222_v15 }
  0x26   :  { %210 = vmatmul.mubr.msk.f32.vlgmr.msra.gmra.mrb[0].mxu0 %vm58_vm4, %v49_v16 }
  0x95   :  { %v42_v17 = vpop.permute.xlu0 %41 }
  0x96   :  { %v48_v19 = vmul.f32 %v178_v18, %v42_v17 }
  0xf9   :  { %v132_v21 = vpop.f32.mrb[0].mxu0 }
  0xfa   :  { %v136_v22 = vadd.f32 %v132_v21, %v48_v19  ;;  %v211_v23 = vpop.f32.mrb[1].mxu0 }
  0xfc   :  { %v141_v24 = vadd.f32 %v181_v20, %v136_v22 }
  0xfe   :  { %235 = vtanh.f32 %v141_v24 }
 0x108   :  { %v236_v26 = vpop.eup %235 }
 0x109   :  { %158 = vst.msk [vmem:[#allocation5] sm:$0xff] %vm58_vm4, %v236_v26  ;;  %v147_v27 = vmul.f32 %v236_v26, %v182_v25 }
 0x10b   :  { %v148_v28 = vsel %vm58_vm4, %v147_v27, 0.0 }
 0x10c   :  { %149 = vadd.xlane.f32.xlu0 %v148_v28 }
 0x10d   :  { %270 = shalt.err (!%p267_p12)
}
 0x10e   :  { %s271_s19 = scalar_lea.hbm %s374_s5, 128 }
 0x10f   :  { %p272_p13 = scmp.ne.s32.totalorder %s374_s5, %s271_s19  ;;  %p275_p0 = scmp.lt.u32.totalorder %s271_s19, %s374_s5 }
 0x111   :  { %p277_p1 = pnand %p275_p0, %p272_p13 }
 0x113   :  { %280 = shalt.err (!%p277_p1)
}
 0x114   :  { %170 = dma.vmem_to_hbm [thread:$0]  %s168_s15, 128, %s374_s5, [#allocation4]   ;;  %v183_v29 = vld [vmem:[%s371_s2 + $0x3] ss:$0 sm:$0xff]  ;;  %vm156_vm5 = vcmask 7168  }
 0x199   :  { %v150_v30 = vpop.xlane.xlu0 %149 }
 0x19a   :  { %v155_v31 = vadd.f32 %v183_v29, %v150_v30 }
 0x19c   :  { %157 = vst.msk [vmem:[%s373_s4] sm:$0xff] %vm156_vm5, %v155_v31 }
 0x19d   :  { %283 = dma.done.wait [#allocation4], 128  }
 0x19e   :  { %284 = vsyncadd [#allocation4], 4294967168 }
 0x19f   :  { %176 = vsyncpa [#allocation3], 1 }
 0x1a0   :  { %177 = vsyncpa [#allocation4], 1 }

</bundles_post_ra>
